<compile_context>
chip_gen: v6e
topology: v6e:2x2x1
jax: 0.10.0
libtpu: 0.0.40
codegen_flags: <defaults>
</compile_context>

<pallas_src>
import functools

import jax
import jax.numpy as jnp
from jax import lax
from jax.experimental import pallas as pl
from jax.experimental.pallas import tpu as pltpu


def _ppo_loss_kernel(probs_ref, pk_ref, out_ref, acc_ref, *,
                     e, c1, c2, inv_b, total_b, need_mask, approx_rcp):
    i = pl.program_id(0)                       # B-tile (reduction) axis

    @pl.when(i == 0)
    def _init():
        acc_ref[...] = jnp.zeros_like(acc_ref)

    probs = probs_ref[...].astype(jnp.float32)     # (TB, A), f32 math even for bf16 inputs
    pk = pk_ref[...]                               # (TB, 8) f32 packed per-sample slab
    value_est = pk[:, 0:1]
    action_pb = pk[:, 1:2]
    gae       = pk[:, 2:3]
    winner    = pk[:, 3:4]
    player    = pk[:, 4:5]
    action    = pk[:, 5:6].astype(jnp.int32)       # exact round-trip for A < 2^24

    tb, a = probs.shape

    # ---- single pass over the probs tile: one-hot gather (+ fused entropy) ----
    col = lax.broadcasted_iota(jnp.int32, (tb, a), dimension=1)
    np_prob = jnp.sum(jnp.where(col == action, probs, 0.0),
                      axis=-1, keepdims=True)                       # (TB, 1)
    if c2 is not None:
        ent = -jnp.sum(probs * jnp.log(probs + 1e-7),
                       axis=-1, keepdims=True)                      # (TB, 1)

    # ---- PPO clipped surrogate (faithful to the module: gae multiplied twice) ----
    if approx_rcp:
        ratio = np_prob * pl.reciprocal(action_pb, approx=True) * gae   # EUP slot
    else:
        ratio = np_prob / action_pb * gae
    clipped_ratio = jnp.clip(ratio, 1.0 - e, 1.0 + e) * gae
    term = -jnp.minimum(ratio, clipped_ratio)

    # ---- value MSE ----
    value_target = jnp.where(player == winner, 1.0, -1.0)
    diff = value_est - value_target
    term = term + c1 * (diff * diff)

    if c2 is not None:
        term = term - c2 * ent

    if need_mask:
        # Boundary tile of a non-tile-multiple B: rows >= B contain undefined
        # data read past the array end.  A select (not a multiply) drops them
        # so NaN/Inf garbage can never propagate into the accumulator.
        row = i * tb + lax.broadcasted_iota(jnp.int32, (tb, 1), dimension=0)
        term = jnp.where(row < total_b, term, 0.0)

    # pure VPU accumulate of per-sample totals (no per-step XLU reduce)
    acc_ref[...] += term

    @pl.when(i == pl.num_programs(0) - 1)
    def _finalize():
        total = jnp.sum(acc_ref[...]) * inv_b        # single XLU reduce at the end
        out_ref[...] = jnp.full(out_ref.shape, total, jnp.float32)


def _round_up(x, m):
    return ((x + m - 1) // m) * m


def _vmem_capacity_bytes():
    try:
        info = pltpu.get_tpu_info()
        return int(getattr(info, "vmem_capacity_bytes", 64 * 1024 * 1024))
    except Exception:
        return 64 * 1024 * 1024     # conservative: v7x per-TC VMEM


def _choose_tile_b(B, A, itemsize, budget):
    # Budget covers the 2-deep probs double buffer; account for Mosaic lane
    # padding (A rounded up to 128) so small-A tiles don't overshoot VMEM.
    a_eff = _round_up(A, 128)
    tb = budget // max(1, 2 * a_eff * itemsize)
    tb = max(8, min(4096, (tb // 8) * 8))
    return min(tb, _round_up(B, 8))


def ppo_loss_pallas(policy_probs, value_est, action_taken, action_prob,
                    winner, player, gae, *, e=0.2, c1=1.0, c2=None,
                    approx_reciprocal=True):
    """Pallas TPU implementation of PPOLoss.forward. Returns a scalar f32."""
    B, A = policy_probs.shape
    assert A < (1 << 24), "action index packed as f32; exact only for A < 2^24"
    f32 = jnp.float32

    cap = _vmem_capacity_bytes()
    if cap >= 96 * 1024 * 1024:            # 128 MiB parts: v5e / v6e
        budget = 24 * 1024 * 1024
        vmem_limit = 64 * 1024 * 1024
    else:                                  # 64 MiB per-TC parts: v7x
        budget = 8 * 1024 * 1024
        vmem_limit = 40 * 1024 * 1024
        # TODO(synk): for very large A on v7x, add an inner A-tiling reduction
        # instead of shrinking tb below ~256 rows.

    tb = _choose_tile_b(B, A, policy_probs.dtype.itemsize, budget)
    nb = (B + tb - 1) // tb
    need_mask = (B % tb) != 0

    # Pack the six per-sample tensors into ONE (B, 8) f32 slab: collapses six
    # tiny DMA pipelines into one.  No padding needed; boundary rows are
    # masked in-kernel.
    def as_col(x):
        return jnp.asarray(x).reshape(B, 1).astype(f32)

    pk = jnp.concatenate(
        [as_col(value_est), as_col(action_prob), as_col(gae),
         as_col(winner), as_col(player), as_col(action_taken),
         jnp.zeros((B, 2), f32)], axis=1)                      # (B, 8)

    kernel = functools.partial(
        _ppo_loss_kernel, e=float(e), c1=float(c1),
        c2=(None if c2 is None else float(c2)),
        inv_b=1.0 / float(B), total_b=int(B),
        need_mask=bool(need_mask), approx_rcp=bool(approx_reciprocal))

    cost = pl.CostEstimate(
        flops=int(B * (4 * A + 24)),
        transcendentals=int(B * ((A if c2 is not None else 0) + 1)),
        bytes_accessed=int(policy_probs.size * policy_probs.dtype.itemsize
                           + pk.size * 4 + 8 * 128 * 4))

    out = pl.pallas_call(
        kernel,
        out_shape=jax.ShapeDtypeStruct((8, 128), f32),
        grid_spec=pltpu.PrefetchScalarGridSpec(
            num_scalar_prefetch=0,
            grid=(nb,),
            in_specs=[
                pl.BlockSpec((tb, A), lambda i: (i, 0)),   # probs stream (dominant)
                pl.BlockSpec((tb, 8), lambda i: (i, 0)),   # packed per-sample slab
            ],
            out_specs=pl.BlockSpec((8, 128), lambda i: (0, 0)),   # lane-dense block
            scratch_shapes=[pltpu.VMEM((tb, 1), f32)],
        ),
        compiler_params=pltpu.CompilerParams(
            dimension_semantics=("arbitrary",),
            vmem_limit_bytes=vmem_limit),
        cost_estimate=cost,
    )(policy_probs, pk)

    return out[0, 0]


def ppo_loss_ref(policy_probs, value_est, action_taken, action_prob,
                 winner, player, gae, *, e=0.2, c1=1.0, c2=None):
    """Pure-JAX reference mirroring the PyTorch forward."""
    value_target = jnp.where(player == winner, 1.0, -1.0)[:, None].astype(jnp.float32)
    np_prob = jnp.take_along_axis(policy_probs,
                                  action_taken[:, None].astype(jnp.int32),
                                  axis=1)[:, 0]
    ratio = np_prob / action_prob * gae
    clipped_ratio = jnp.clip(ratio, 1.0 - e, 1.0 + e) * gae
    clipped_loss = -jnp.mean(jnp.minimum(ratio, clipped_ratio))
    value_loss = jnp.mean((value_est.reshape(-1, 1) - value_target) ** 2)
    total = clipped_loss + c1 * value_loss
    if c2 is not None:
        ent = -jnp.sum(policy_probs * jnp.log(policy_probs + 1e-7), axis=-1)
        total = total - c2 * jnp.mean(ent)
    return total


if __name__ == "__main__":
    A = 16
    for B in (8, 13):            # 13 exercises the unpadded boundary-tile mask
        key = jax.random.PRNGKey(0)
        k1, k2, k3, k4, k5, k6, k7 = jax.random.split(key, 7)

        policy_probs = jax.nn.softmax(
            jax.random.normal(k1, (B, A), dtype=jnp.float32), axis=-1)
        value_est = jax.random.normal(k2, (B, 1), dtype=jnp.float32)
        action_taken = jax.random.randint(k3, (B,), 0, A, dtype=jnp.int32)
        action_prob = jax.random.uniform(k4, (B,), minval=0.1, maxval=1.0,
                                         dtype=jnp.float32)
        winner = jax.random.randint(k5, (B,), 0, 2, dtype=jnp.int32)
        player = jax.random.randint(k6, (B,), 0, 2, dtype=jnp.int32)
        gae = jax.random.normal(k7, (B,), dtype=jnp.float32)

        for c2 in (None, 0.01):
            ref = ppo_loss_ref(policy_probs, value_est, action_taken, action_prob,
                               winner, player, gae, e=0.2, c1=1.0, c2=c2)

            # Exact-divide path: tight check against the pure-JAX reference.
            out = ppo_loss_pallas(policy_probs, value_est, action_taken, action_prob,
                                  winner, player, gae, e=0.2, c1=1.0, c2=c2,
                                  approx_reciprocal=False)
            out = jax.block_until_ready(out)
            assert jnp.allclose(out, ref, atol=1e-5, rtol=1e-5), (B, c2, out, ref)

            # Fast path: EUP approximate reciprocal; looser tolerance reflects
            # the hardware approx rcp on a loss scalar.
            out_a = ppo_loss_pallas(policy_probs, value_est, action_taken, action_prob,
                                    winner, player, gae, e=0.2, c1=1.0, c2=c2,
                                    approx_reciprocal=True)
            out_a = jax.block_until_ready(out_a)
            assert jnp.allclose(out_a, ref, atol=2e-2, rtol=2e-2), (B, c2, out_a, ref)

    print("KERNEL_OK")
</pallas_src>

<mosaic_0001>
module attributes {stable_mosaic.version = 11 : i64} {
  func.func @_ppo_loss_kernel(%arg0: i32, %arg1: memref<8x16xf32, #tpu.memory_space<vmem>>, %arg2: memref<8x8xf32, #tpu.memory_space<vmem>>, %arg3: memref<8x128xf32, #tpu.memory_space<vmem>>, %arg4: memref<8x1xf32, #tpu.memory_space<vmem>>) attributes {dimension_semantics = [#tpu.dimension_semantics<arbitrary>], iteration_bounds = array<i64: 1>, scalar_prefetch = 0 : i64, scratch_operands = 1 : i64, tpu.core_type = #tpu.core_type<tc>, window_params = [{transform_indices = @transform_0, window_bounds = array<i64: 8, 16>}, {transform_indices = @transform_1, window_bounds = array<i64: 8, 8>}, {pipeline_mode = #tpu.pipeline_mode<synchronous>, transform_indices = @transform_2, window_bounds = array<i64: 8, 128>}]} {
    %c0_i32 = arith.constant 0 : i32
    %0 = arith.cmpi eq, %arg0, %c0_i32 : i32
    %1 = arith.extui %0 : i1 to i32
    %c0_i32_0 = arith.constant 0 : i32
    %2 = arith.cmpi ne, %1, %c0_i32_0 : i32
    scf.if %2 {
      %cst_17 = arith.constant 0.000000e+00 : f32
      %44 = vector.broadcast %cst_17 : f32 to vector<8x1xf32>
      %c0_18 = arith.constant 0 : index
      %c0_19 = arith.constant 0 : index
      %45 = vector.load %arg4[%c0_18, %c0_19] : memref<8x1xf32, #tpu.memory_space<vmem>>, vector<8x1xf32>
      tpu.vector_store %arg4[%c0_18, %c0_19], %44 {strides = array<i32>} : memref<8x1xf32, #tpu.memory_space<vmem>>, vector<8x1xf32>,
    } else {
    }
    %c0 = arith.constant 0 : index
    %c0_1 = arith.constant 0 : index
    %3 = vector.load %arg1[%c0, %c0_1] : memref<8x16xf32, #tpu.memory_space<vmem>>, vector<8x16xf32>
    %c0_2 = arith.constant 0 : index
    %c0_3 = arith.constant 0 : index
    %4 = vector.load %arg2[%c0_2, %c0_3] : memref<8x8xf32, #tpu.memory_space<vmem>>, vector<8x8xf32>
    %5 = vector.extract_strided_slice %4 {offsets = [0, 0], sizes = [8, 1], strides = [1, 1]} : vector<8x8xf32> to vector<8x1xf32>
    %6 = vector.extract_strided_slice %4 {offsets = [0, 1], sizes = [8, 1], strides = [1, 1]} : vector<8x8xf32> to vector<8x1xf32>
    %7 = vector.extract_strided_slice %4 {offsets = [0, 2], sizes = [8, 1], strides = [1, 1]} : vector<8x8xf32> to vector<8x1xf32>
    %8 = vector.extract_strided_slice %4 {offsets = [0, 3], sizes = [8, 1], strides = [1, 1]} : vector<8x8xf32> to vector<8x1xf32>
    %9 = vector.extract_strided_slice %4 {offsets = [0, 4], sizes = [8, 1], strides = [1, 1]} : vector<8x8xf32> to vector<8x1xf32>
    %10 = vector.extract_strided_slice %4 {offsets = [0, 5], sizes = [8, 1], strides = [1, 1]} : vector<8x8xf32> to vector<8x1xf32>
    %11 = arith.fptosi %10 : vector<8x1xf32> to vector<8x1xi32>
    %12 = tpu.iota {dimensions = array<i32: 1>} : vector<8x16xi32>
    %13 = vector.broadcast %11 : vector<8x1xi32> to vector<8x16xi32>
    %14 = arith.cmpi eq, %12, %13 : vector<8x16xi32>
    %cst = arith.constant 0.000000e+00 : f32
    %15 = vector.broadcast %cst : f32 to vector<8x16xf32>
    %16 = arith.select %14, %3, %15 : vector<8x16xi1>, vector<8x16xf32>
    %cst_4 = arith.constant dense<0.000000e+00> : vector<8xf32>
    %17 = vector.multi_reduction <add>, %16, %cst_4 [1] : vector<8x16xf32> to vector<8xf32>
    %18 = vector.shape_cast %17 : vector<8xf32> to vector<8x1xf32>
    %19 = arith.divf %18, %6 : vector<8x1xf32>
    %20 = arith.mulf %19, %7 : vector<8x1xf32>
    %cst_5 = arith.constant 8.000000e-01 : f32
    %cst_6 = arith.constant 1.200000e+00 : f32
    %21 = vector.broadcast %cst_5 : f32 to vector<8x1xf32>
    %22 = arith.maximumf %21, %20 : vector<8x1xf32>
    %23 = vector.broadcast %cst_6 : f32 to vector<8x1xf32>
    %24 = arith.minimumf %23, %22 : vector<8x1xf32>
    %25 = arith.mulf %24, %7 : vector<8x1xf32>
    %26 = arith.minimumf %20, %25 : vector<8x1xf32>
    %cst_7 = arith.constant 0.000000e+00 : f32
    %27 = vector.broadcast %cst_7 : f32 to vector<8x1xf32>
    %28 = arith.subf %27, %26 : vector<8x1xf32>
    %29 = arith.cmpf oeq, %9, %8 : vector<8x1xf32>
    %cst_8 = arith.constant 1.000000e+00 : f32
    %cst_9 = arith.constant -1.000000e+00 : f32
    %30 = vector.broadcast %cst_8 : f32 to vector<8x1xf32>
    %31 = vector.broadcast %cst_9 : f32 to vector<8x1xf32>
    %32 = arith.select %29, %30, %31 : vector<8x1xi1>, vector<8x1xf32>
    %33 = arith.subf %5, %32 : vector<8x1xf32>
    %34 = arith.mulf %33, %33 : vector<8x1xf32>
    %cst_10 = arith.constant 1.000000e+00 : f32
    %35 = vector.broadcast %cst_10 : f32 to vector<8x1xf32>
    %36 = arith.mulf %35, %34 : vector<8x1xf32>
    %37 = arith.addf %28, %36 : vector<8x1xf32>
    %c0_11 = arith.constant 0 : index
    %c0_12 = arith.constant 0 : index
    %38 = vector.load %arg4[%c0_11, %c0_12] : memref<8x1xf32, #tpu.memory_space<vmem>>, vector<8x1xf32>
    %39 = arith.addf %38, %37 : vector<8x1xf32>
    %c0_13 = arith.constant 0 : index
    %c0_14 = arith.constant 0 : index
    %40 = vector.load %arg4[%c0_13, %c0_14] : memref<8x1xf32, #tpu.memory_space<vmem>>, vector<8x1xf32>
    tpu.vector_store %arg4[%c0_13, %c0_14], %39 {strides = array<i32>} : memref<8x1xf32, #tpu.memory_space<vmem>>, vector<8x1xf32>,
    %c0_i32_15 = arith.constant 0 : i32
    %41 = arith.cmpi eq, %arg0, %c0_i32_15 : i32
    %42 = arith.extui %41 : i1 to i32
    %c0_i32_16 = arith.constant 0 : i32
    %43 = arith.cmpi ne, %42, %c0_i32_16 : i32
    scf.if %43 {
      %c0_17 = arith.constant 0 : index
      %c0_18 = arith.constant 0 : index
      %44 = vector.load %arg4[%c0_17, %c0_18] : memref<8x1xf32, #tpu.memory_space<vmem>>, vector<8x1xf32>
      %45 = vector.shape_cast %44 : vector<8x1xf32> to vector<1x8x1xf32>
      %cst_19 = arith.constant dense<0.000000e+00> : vector<1xf32>
      %46 = vector.multi_reduction <add>, %45, %cst_19 [1, 2] : vector<1x8x1xf32> to vector<1xf32>
      %47 = vector.shape_cast %46 : vector<1xf32> to vector<1x1x1xf32>
      %48 = vector.extract %47[0, 0, 0] : f32 from vector<1x1x1xf32>
      %cst_20 = arith.constant 1.250000e-01 : f32
      %49 = arith.mulf %48, %cst_20 : f32
      %50 = vector.broadcast %49 : f32 to vector<8x128xf32>
      %c0_21 = arith.constant 0 : index
      %c0_22 = arith.constant 0 : index
      %51 = vector.load %arg3[%c0_21, %c0_22] : memref<8x128xf32, #tpu.memory_space<vmem>>, vector<8x128xf32>
      tpu.vector_store %arg3[%c0_21, %c0_22], %50 {strides = array<i32>} : memref<8x128xf32, #tpu.memory_space<vmem>>, vector<8x128xf32>,
    } else {
    }
    return
  }
  func.func @transform_0(%arg0: i32) -> (i32, i32) {
    %c0_i32 = arith.constant 0 : i32
    %c0_i32_0 = arith.constant 0 : i32
    return %arg0, %c0_i32 : i32, i32
  }
  func.func @transform_1(%arg0: i32) -> (i32, i32) {
    %c0_i32 = arith.constant 0 : i32
    %c0_i32_0 = arith.constant 0 : i32
    return %arg0, %c0_i32 : i32, i32
  }
  func.func @transform_2(%arg0: i32) -> (i32, i32) {
    %c0_i32 = arith.constant 0 : i32
    %c0_i32_0 = arith.constant 0 : i32
    %c0_i32_1 = arith.constant 0 : i32
    return %c0_i32, %c0_i32_0 : i32, i32
  }
}

</mosaic_0001>

<bundles_post_ra>
// kernel: tpu_custom_call.1
= control target key start
LH: loop header
LB: loop body
LE: loop exit
PB: predicated region body
PF: predicated region fallthrough
CT: control target
= control target key end

     0   :  { %7 = vsyncpa [#allocation4], 0  ;;  %s245_s0 = inlined_call_operand.hbm [shape: f32[8,16], index: 0, kind: input, shape index: {}]   ;;  %s246_s1 = inlined_call_operand.hbm [shape: f32[8,8], index: 1, kind: input, shape index: {}]   ;;  %s247_s2 = inlined_call_operand.hbm [shape: f32[8,128], index: 2, kind: output, shape index: {}]  }
   0x1   :  { %8 = vsyncpa [#allocation7], 0 }
   0x2   :  { %9 = vsyncpa [#allocation5], 0  ;;  %s207_s9 = smov [#allocation3]   ;;  %s208_s11 = smov [#allocation6]  }
   0x3   :  { %s16_s10 = sshll.u32 %s207_s9, 4  ;;  %s26_s12 = sshll.u32 %s208_s11, 4  ;;  %s17_s10 = int_to_ptr.vmem [resolvable:$true] %s16_s10  ;;  %s27_s12 = int_to_ptr.vmem [resolvable:$true] %s26_s12 }
   0x4   :  { %s149_s13 = scalar_lea.vmem %s17_s10, 128  ;;  %p154_p1 = scmp.lt.s32.totalorder %s17_s10, %s17_s10 }
   0x5   :  { %p150_p0 = scmp.ne.s32.totalorder %s17_s10, %s149_s13  ;;  %p155_p2 = scmp.lt.s32.totalorder %s149_s13, %s149_s13 }
   0x7   :  { %p156_p3 = por %p155_p2, %p154_p1 }
   0x9   :  { %p157_p4 = pnand %p156_p3, %p150_p0 }
   0xb   :  { %160 = shalt.err (!%p157_p4)
}
   0xc   :  { %19 = dma.hbm_to_vmem [thread:$0]  %s245_s0, 128, %s17_s10, [#allocation4]  }
   0xd   :  { %s169_s16 = scalar_lea.vmem %s27_s12, 128  ;;  %p174_p6 = scmp.lt.s32.totalorder %s27_s12, %s27_s12 }
   0xe   :  { %p170_p5 = scmp.ne.s32.totalorder %s27_s12, %s169_s16  ;;  %p175_p7 = scmp.lt.s32.totalorder %s169_s16, %s169_s16 }
  0x10   :  { %p176_p8 = por %p175_p7, %p174_p6 }
  0x12   :  { %p177_p9 = pnand %p176_p8, %p170_p5 }
  0x14   :  { %180 = shalt.err (!%p177_p9)
}
  0x15   :  { %29 = dma.hbm_to_vmem [thread:$0]  %s246_s1, 128, %s27_s12, [#allocation7]  }
  0x16   :  { %201 = dma.done.wait [#allocation4], 128  }
  0x17   :  { %202 = vsyncadd [#allocation4], 4294967168 }
  0x18   :  { %203 = dma.done.wait [#allocation7], 128  }
  0x19   :  { %204 = vsyncadd [#allocation7], 4294967168  ;;  %v209_v0 = vmov 5   ;;  %v43_v1 = vld [vmem:[#allocation6] sm:$0xff]  ;;  %s210_s19 = smov 1   ;;  %s211_s0 = smov 127   ;;  %v45_v7 = vlaneseq }
  0x1a   :  { %138 = vset.pattern.permute.xlu0 %v209_v0  ;;  %v125_v2 = vtrunc.f32 %v43_v1  ;;  %v212_v5 = vmov -1.0   ;;  %s213_s1 = smov 124   ;;  %v42_v10 = vld [vmem:[#allocation3] sm:$0xff]  ;;  %vm52_vm2 = vcmask 130048   ;;  %vm40_vm3 = vcmask 7168   ;;  %s215_s20 = smov [#allocation8]  }
  0x1b   :  { %68 = vrot.lane.b32.xlu0 %v43_v1, %s210_s19  ;;  %v46_v8 = vand.u32 127, %v45_v7  ;;  %v214_v13 = vmov 0.0   ;;  %139 = vrcp.f32 %v43_v1  ;;  %s115_s21 = sshll.u32 %s215_s20, 4  ;;  %s116_s21 = int_to_ptr.vmem [resolvable:$true] %s115_s21 }
  0x1c   :  { %v126_v3 = vcvt.f32.s32 %v125_v2  ;;  %41 = vst.msk [vmem:[#allocation2] sm:$0xff] %vm40_vm3, %v214_v13  ;;  %s181_s24 = scalar_lea.vmem %s116_s21, 128  ;;  %p186_p11 = scmp.lt.s32.totalorder %s116_s21, %s116_s21 }
  0x1d   :  { %p182_p10 = scmp.ne.s32.totalorder %s116_s21, %s181_s24  ;;  %p187_p12 = scmp.lt.s32.totalorder %s181_s24, %s181_s24 }
  0x1f   :  { %48 = vperm.xlu0 %138, %v126_v3   ;;  %p188_p13 = por %p187_p12, %p186_p11 }
  0x21   :  { %p189_p0 = pnand %p188_p13, %p182_p10 }
  0x23   :  { %59 = vrot.lane.b32.xlu0 %v43_v1, %s211_s0  ;;  %v84_v29 = vld [vmem:[#allocation2] sm:$0xff] }
  0x28   :  { %v140_v17 = vpop.eup %139 }
  0x8d   :  { %v69_v4 = vpop.permute.xlu0 %68 }
  0x8e   :  { %vm71_vm0 = vcmp.eq.f32.partialorder %v43_v1, %v69_v4 }
  0x8f   :  { %v72_v6 = vsel %vm71_vm0, 1.0, %v212_v5 }
  0x90   :  { %74 = vrot.lane.b32.xlu1 %v72_v6, %s213_s1 }
  0x9a   :  { %v49_v9 = vpop.permute.xlu0 %48 }
  0x9b   :  { %vm50_vm1 = vcmp.eq.s32.totalorder %v46_v8, %v49_v9 }
  0x9c   :  { %v51_v11 = vsel %vm50_vm1, %v42_v10, 0.0 }
  0x9d   :  { %v53_v12 = vsel %vm52_vm2, %v51_v11, 0.0 }
  0x9e   :  { %v60_v20 = vpop.permute.xlu0 %59 }
  0xb4   :  { %54 = vadd.xlane.f32.xlu1 %v53_v12 }
 0x102   :  { %v75_v14 = vpop.permute.xlu1 %74 }
 0x103   :  { %v77_v15 = vsub.f32 %v43_v1, %v75_v14 }
 0x105   :  { %v78_v16 = vmul.f32 %v77_v15, %v77_v15 }
 0x107   :  { %80 = vrot.lane.b32.xlu0 %v78_v16, %s210_s19 }
 0x13d   :  { %v55_v18 = vpop.xlane.xlu1 %54 }
 0x13e   :  { %v57_v19 = vmul.f32 %v140_v17, %v55_v18 }
 0x140   :  { %v62_v21 = vmul.f32 %v60_v20, %v57_v19 }
 0x142   :  { %v63_v22 = vmax.f32 %v62_v21, 0.8 }
 0x144   :  { %v64_v23 = vmin.f32 %v63_v22, 1.2 }
 0x146   :  { %v65_v24 = vmul.f32 %v64_v23, %v60_v20 }
 0x148   :  { %v66_v25 = vmin.f32 %v62_v21, %v65_v24 }
 0x14a   :  { %v67_v26 = vsub.f32 0.0, %v66_v25 }
 0x179   :  { %v81_v27 = vpop.permute.xlu0 %80 }
 0x17a   :  { %v83_v28 = vadd.f32 %v81_v27, %v67_v26 }
 0x17c   :  { %86 = vrot.lane.b32.xlu0 %v83_v28, %s211_s0 }
 0x1ee   :  { %v87_v30 = vpop.permute.xlu0 %86 }
 0x1ef   :  { %v89_v31 = vadd.f32 %v87_v30, %v84_v29 }
 0x1f1   :  { %91 = vst.msk [vmem:[#allocation2] sm:$0xff] %vm40_vm3, %v89_v31 }
 0x1f8   :  { %v95_v32 = vld [vmem:[#allocation2] sm:$0xff] }
 0x1f9   :  { %v96_v33 = vsel %vm40_vm3, %v95_v32, 0.0 }
 0x1fa   :  { %97 = vadd.xlane.f32.xlu0 %v96_v33 }
 0x283   :  { %v98_v34 = vpop.xlane.xlu0 %97 }
 0x284   :  { %v99_v35 = vrot.slane %v98_v34, 4 }
 0x286   :  { %v100_v36 = vadd.f32 %v99_v35, %v98_v34 }
 0x288   :  { %v101_v37 = vrot.slane %v100_v36, 2 }
 0x28a   :  { %v102_v38 = vadd.f32 %v101_v37, %v100_v36 }
 0x28c   :  { %v103_v39 = vrot.slane %v102_v38, 1 }
 0x28e   :  { %v104_v40 = vadd.f32 %v103_v39, %v102_v38 }
 0x290   :  { %127 = vpush %v104_v40 }
 0x2c1   :  { %s128_s22 = spop %127 }
 0x2c2   :  { %s106_s23 = smul.f32 0.125, %s128_s22 }
 0x2c4   :  { %v107_v41 = vstv %s106_s23 }
 0x2c5   :  { %108 = vst [vmem:[#allocation8] sm:$0xff] %v107_v41 }
 0x2c6   :  { %192 = shalt.err (!%p189_p0)
}
 0x2c7   :  { %118 = dma.vmem_to_hbm [thread:$0]  %s116_s21, 128, %s247_s2, [#allocation5]  }
 0x2c8   :  { %205 = dma.done.wait [#allocation5], 128  }
 0x2c9   :  { %206 = vsyncadd [#allocation5], 4294967168 }
 0x2ca   :  { %122 = vsyncpa [#allocation4], 1 }
 0x2cb   :  { %123 = vsyncpa [#allocation7], 1 }
 0x2cc   :  { %124 = vsyncpa [#allocation5], 1 }

</bundles_post_ra>
